<compile_context>
chip_gen: v5e
topology: v5e:2x2
jax: 0.10.0
libtpu: 0.0.40
codegen_flags: <defaults>
</compile_context>

<pallas_src>
import math

import jax
import jax.numpy as jnp
from jax.experimental import pallas as pl
from jax.experimental.pallas import tpu as pltpu


# ----------------------------------------------------------------------------
# Pallas kernel: one TransformerEncoderLayer for one (batch, q-tile) grid point.
# ----------------------------------------------------------------------------
def make_layer_kernel(num_heads, d_k, eps=1e-5):
    scale = 1.0 / math.sqrt(d_k)
    dn_qk = (((1,), (1,)), ((), ()))    # contract q/k on the d_k axis (no explicit kh.T)

    def kernel(xt_ref, xf_ref,
               wq_ref, bq_ref, wk_ref, bk_ref, wv_ref, bv_ref, wo_ref, bo_ref,
               g1_ref, be1_ref, g2_ref, be2_ref,
               w1_ref, bf1_ref, w2_ref, bf2_ref,
               o_ref):
        x_t = xt_ref[...].astype(jnp.float32)        # (tS, D)  query tile (residual stream)
        x_f = xf_ref[...].astype(jnp.float32)        # (S,  D)  full sequence for K/V

        def layernorm(t, g, b):
            mu = jnp.mean(t, axis=-1, keepdims=True)
            var = jnp.mean((t - mu) ** 2, axis=-1, keepdims=True)
            return (t - mu) * jax.lax.rsqrt(var + eps) * g + b

        g1, be1 = g1_ref[...], be1_ref[...]

        # ---- self-attention block (pre-norm) ----
        x2_t = layernorm(x_t, g1, be1).astype(jnp.bfloat16)     # (tS, D)
        x2_f = layernorm(x_f, g1, be1).astype(jnp.bfloat16)     # (S,  D)

        # bf16 operands, f32 accumulate (full-rate MXU).
        q = jnp.dot(x2_t, wq_ref[...], preferred_element_type=jnp.float32) + bq_ref[...]
        k = jnp.dot(x2_f, wk_ref[...], preferred_element_type=jnp.float32) + bk_ref[...]
        v = jnp.dot(x2_f, wv_ref[...], preferred_element_type=jnp.float32) + bv_ref[...]
        q = q.astype(jnp.bfloat16)
        k = k.astype(jnp.bfloat16)
        v = v.astype(jnp.bfloat16)
        wo = wo_ref[...]                                         # (D, D) bf16

        # Per-head attention folded directly into the wo projection accumulation
        # (no concat of head outputs, no (S, D) attention temporary).
        attn_proj = jnp.zeros_like(x_t)                          # (tS, D) f32
        for h in range(num_heads):                               # static unroll: small H
            sl = slice(h * d_k, (h + 1) * d_k)
            qh, kh, vh = q[:, sl], k[:, sl], v[:, sl]            # (tS,d_k),(S,d_k),(S,d_k)
            s = jax.lax.dot_general(qh, kh, dn_qk,
                                    preferred_element_type=jnp.float32) * scale  # (tS, S)
            s = s - jnp.max(s, axis=-1, keepdims=True)           # stable softmax
            e = jnp.exp(s)                                       # EUP
            inv = pl.reciprocal(jnp.sum(e, axis=-1, keepdims=True), approx=True)  # EUP
            pv = jnp.dot(e.astype(jnp.bfloat16), vh,
                         preferred_element_type=jnp.float32)     # (tS, d_k)
            head = (pv * inv).astype(jnp.bfloat16)               # normalize the small tile
            attn_proj = attn_proj + jnp.dot(head, wo[sl, :],
                                            preferred_element_type=jnp.float32)

        x_t = x_t + attn_proj + bo_ref[...]                      # residual 1

        # ---- feed-forward block (pre-norm) ----
        x2 = layernorm(x_t, g2_ref[...], be2_ref[...]).astype(jnp.bfloat16)
        h1 = jnp.maximum(
            jnp.dot(x2, w1_ref[...], preferred_element_type=jnp.float32) + bf1_ref[...],
            0.0)
        ff = jnp.dot(h1.astype(jnp.bfloat16), w2_ref[...],
                     preferred_element_type=jnp.float32) + bf2_ref[...]

        o_ref[...] = (x_t + ff).astype(o_ref.dtype)              # residual 2

    return kernel


PARAM_ORDER = ("wq", "bq", "wk", "bk", "wv", "bv", "wo", "bo",
               "g1", "be1", "g2", "be2",
               "w1", "bf1", "w2", "bf2")
MATMUL_WEIGHTS = frozenset(("wq", "wk", "wv", "wo", "w1", "w2"))


def _pick_seq_tile(S, max_tile=256):
    """Largest tile <= max_tile that divides S (falls back to full S)."""
    for cand in (256, 128, 64, 32, 16, 8):
        if cand <= max_tile and cand <= S and S % cand == 0:
            return cand
    return S


def encoder_layer(x, params, num_heads):
    """One TransformerEncoderLayer. x: (B, S, D) float32."""
    B, S, D = x.shape
    d_k = D // num_heads
    tS = _pick_seq_tile(S)
    kernel = make_layer_kernel(num_heads, d_k)

    # Matmul weights go to bf16 at the boundary (halves weight DMA, full-rate MXU);
    # biases / layernorm params stay f32 (added after f32 accumulation).
    args = []
    for name in PARAM_ORDER:
        a = params[name]
        if name in MATMUL_WEIGHTS:
            a = a.astype(jnp.bfloat16)
        args.append(a)

    def resident_spec(a):
        nd = a.ndim
        return pl.BlockSpec(a.shape, lambda b, qt, _n=nd: (0,) * _n)

    in_specs = [
        # query tile of the residual stream
        pl.BlockSpec((pl.Squeezed(), tS, D), lambda b, qt: (b, qt, 0)),
        # full sequence for K/V; index constant in qt -> stays resident across q-tiles
        pl.BlockSpec((pl.Squeezed(), S, D), lambda b, qt: (b, 0, 0)),
    ] + [resident_spec(a) for a in args]

    out_specs = pl.BlockSpec((pl.Squeezed(), tS, D), lambda b, qt: (b, qt, 0))

    return pl.pallas_call(
        kernel,
        out_shape=jax.ShapeDtypeStruct((B, S, D), x.dtype),
        grid=(B, S // tS),
        in_specs=in_specs,
        out_specs=out_specs,
        compiler_params=pltpu.CompilerParams(
            dimension_semantics=("parallel", "parallel")),
        # NOTE: at production shapes, raise vmem_limit_bytes here (leave headroom,
        # especially on v7x's 64 MiB physical VMEM).
    )(x, x, *args)


def transformer_encoder(x, layer_params, num_heads):
    for p in layer_params:
        x = encoder_layer(x, p, num_heads)
    return x


# ----------------------------------------------------------------------------
# Pure-JAX f32 reference (mirrors the PyTorch forward exactly) for verification.
# ----------------------------------------------------------------------------
def reference_encoder(x, layer_params, num_heads, eps=1e-5):
    B, S, D = x.shape
    d_k = D // num_heads

    def layernorm(t, g, b):
        mu = jnp.mean(t, axis=-1, keepdims=True)
        var = jnp.mean((t - mu) ** 2, axis=-1, keepdims=True)
        return (t - mu) / jnp.sqrt(var + eps) * g + b

    for p in layer_params:
        x2 = layernorm(x, p["g1"], p["be1"])
        q = x2 @ p["wq"] + p["bq"]
        k = x2 @ p["wk"] + p["bk"]
        v = x2 @ p["wv"] + p["bv"]
        q = q.reshape(B, S, num_heads, d_k).transpose(0, 2, 1, 3)
        k = k.reshape(B, S, num_heads, d_k).transpose(0, 2, 1, 3)
        v = v.reshape(B, S, num_heads, d_k).transpose(0, 2, 1, 3)
        s = jnp.einsum("bhqd,bhkd->bhqk", q, k) / math.sqrt(d_k)
        a = jax.nn.softmax(s, axis=-1)
        o = jnp.einsum("bhqk,bhkd->bhqd", a, v)
        o = o.transpose(0, 2, 1, 3).reshape(B, S, D)
        x = x + (o @ p["wo"] + p["bo"])

        x2 = layernorm(x, p["g2"], p["be2"])
        h1 = jnp.maximum(x2 @ p["w1"] + p["bf1"], 0.0)
        x = x + (h1 @ p["w2"] + p["bf2"])
    return x


# ----------------------------------------------------------------------------
# Deterministic parameter construction + run.
# ----------------------------------------------------------------------------
def init_params(key, num_layers, d_model, d_ff):
    layers = []
    shapes = {
        "wq": (d_model, d_model), "bq": (1, d_model),
        "wk": (d_model, d_model), "bk": (1, d_model),
        "wv": (d_model, d_model), "bv": (1, d_model),
        "wo": (d_model, d_model), "bo": (1, d_model),
        "w1": (d_model, d_ff),    "bf1": (1, d_ff),
        "w2": (d_ff, d_model),    "bf2": (1, d_model),
    }
    for _ in range(num_layers):
        p = {}
        for name, shp in shapes.items():
            key, sub = jax.random.split(key)
            p[name] = jax.random.normal(sub, shp, dtype=jnp.float32) * 0.05
        p["g1"] = jnp.ones((1, d_model), jnp.float32)
        p["be1"] = jnp.zeros((1, d_model), jnp.float32)
        p["g2"] = jnp.ones((1, d_model), jnp.float32)
        p["be2"] = jnp.zeros((1, d_model), jnp.float32)
        layers.append(p)
    return layers, key


if __name__ == "__main__":
    NUM_LAYERS, D_MODEL, NUM_HEADS, D_FF = 2, 32, 4, 64
    B, S = 2, 8

    key = jax.random.PRNGKey(0)
    layer_params, key = init_params(key, NUM_LAYERS, D_MODEL, D_FF)
    key, xk = jax.random.split(key)
    x = jax.random.normal(xk, (B, S, D_MODEL), dtype=jnp.float32)

    out = transformer_encoder(x, layer_params, NUM_HEADS)
    out = jax.block_until_ready(out)

    ref = reference_encoder(x, layer_params, NUM_HEADS)
    assert out.shape == (B, S, D_MODEL)
    max_err = float(jnp.max(jnp.abs(out - ref)))
    # bf16 matmul operands + approx reciprocal loosen the f32 tolerance slightly.
    assert jnp.allclose(out, ref, rtol=3e-2, atol=3e-2), \
        f"mismatch vs reference (max abs err {max_err})"

    print("KERNEL_OK")
</pallas_src>

<mosaic_0001>
module attributes {stable_mosaic.version = 11 : i64} {
  func.func @kernel(%arg0: i32, %arg1: i32, %arg2: memref<1x8x32xf32, #tpu.memory_space<vmem>>, %arg3: memref<1x8x32xf32, #tpu.memory_space<vmem>>, %arg4: memref<32x32xbf16, #tpu.memory_space<vmem>>, %arg5: memref<1x32xf32, #tpu.memory_space<vmem>>, %arg6: memref<32x32xbf16, #tpu.memory_space<vmem>>, %arg7: memref<1x32xf32, #tpu.memory_space<vmem>>, %arg8: memref<32x32xbf16, #tpu.memory_space<vmem>>, %arg9: memref<1x32xf32, #tpu.memory_space<vmem>>, %arg10: memref<32x32xbf16, #tpu.memory_space<vmem>>, %arg11: memref<1x32xf32, #tpu.memory_space<vmem>>, %arg12: memref<1x32xf32, #tpu.memory_space<vmem>>, %arg13: memref<1x32xf32, #tpu.memory_space<vmem>>, %arg14: memref<1x32xf32, #tpu.memory_space<vmem>>, %arg15: memref<1x32xf32, #tpu.memory_space<vmem>>, %arg16: memref<32x64xbf16, #tpu.memory_space<vmem>>, %arg17: memref<1x64xf32, #tpu.memory_space<vmem>>, %arg18: memref<64x32xbf16, #tpu.memory_space<vmem>>, %arg19: memref<1x32xf32, #tpu.memory_space<vmem>>, %arg20: memref<1x8x32xf32, #tpu.memory_space<vmem>>) attributes {dimension_semantics = [#tpu.dimension_semantics<parallel>, #tpu.dimension_semantics<parallel>], iteration_bounds = array<i64: 2, 1>, scalar_prefetch = 0 : i64, scratch_operands = 0 : i64, tpu.core_type = #tpu.core_type<tc>, window_params = [{transform_indices = @transform_0, window_bounds = array<i64: 1, 8, 32>}, {transform_indices = @transform_1, window_bounds = array<i64: 1, 8, 32>}, {pipeline_mode = #tpu.pipeline_mode<synchronous>, transform_indices = @transform_2, window_bounds = array<i64: 32, 32>}, {pipeline_mode = #tpu.pipeline_mode<synchronous>, transform_indices = @transform_3, window_bounds = array<i64: 1, 32>}, {pipeline_mode = #tpu.pipeline_mode<synchronous>, transform_indices = @transform_4, window_bounds = array<i64: 32, 32>}, {pipeline_mode = #tpu.pipeline_mode<synchronous>, transform_indices = @transform_5, window_bounds = array<i64: 1, 32>}, {pipeline_mode = #tpu.pipeline_mode<synchronous>, transform_indices = @transform_6, window_bounds = array<i64: 32, 32>}, {pipeline_mode = #tpu.pipeline_mode<synchronous>, transform_indices = @transform_7, window_bounds = array<i64: 1, 32>}, {pipeline_mode = #tpu.pipeline_mode<synchronous>, transform_indices = @transform_8, window_bounds = array<i64: 32, 32>}, {pipeline_mode = #tpu.pipeline_mode<synchronous>, transform_indices = @transform_9, window_bounds = array<i64: 1, 32>}, {pipeline_mode = #tpu.pipeline_mode<synchronous>, transform_indices = @transform_10, window_bounds = array<i64: 1, 32>}, {pipeline_mode = #tpu.pipeline_mode<synchronous>, transform_indices = @transform_11, window_bounds = array<i64: 1, 32>}, {pipeline_mode = #tpu.pipeline_mode<synchronous>, transform_indices = @transform_12, window_bounds = array<i64: 1, 32>}, {pipeline_mode = #tpu.pipeline_mode<synchronous>, transform_indices = @transform_13, window_bounds = array<i64: 1, 32>}, {pipeline_mode = #tpu.pipeline_mode<synchronous>, transform_indices = @transform_14, window_bounds = array<i64: 32, 64>}, {pipeline_mode = #tpu.pipeline_mode<synchronous>, transform_indices = @transform_15, window_bounds = array<i64: 1, 64>}, {pipeline_mode = #tpu.pipeline_mode<synchronous>, transform_indices = @transform_16, window_bounds = array<i64: 64, 32>}, {pipeline_mode = #tpu.pipeline_mode<synchronous>, transform_indices = @transform_17, window_bounds = array<i64: 1, 32>}, {transform_indices = @transform_18, window_bounds = array<i64: 1, 8, 32>}]} {
    %c0 = arith.constant 0 : index
    %c0_0 = arith.constant 0 : index
    %c0_1 = arith.constant 0 : index
    %0 = vector.load %arg2[%c0, %c0_0, %c0_1] : memref<1x8x32xf32, #tpu.memory_space<vmem>>, vector<1x8x32xf32>
    %1 = vector.shape_cast %0 : vector<1x8x32xf32> to vector<8x32xf32>
    %c0_2 = arith.constant 0 : index
    %c0_3 = arith.constant 0 : index
    %c0_4 = arith.constant 0 : index
    %2 = vector.load %arg3[%c0_2, %c0_3, %c0_4] : memref<1x8x32xf32, #tpu.memory_space<vmem>>, vector<1x8x32xf32>
    %3 = vector.shape_cast %2 : vector<1x8x32xf32> to vector<8x32xf32>
    %c0_5 = arith.constant 0 : index
    %c0_6 = arith.constant 0 : index
    %4 = vector.load %arg12[%c0_5, %c0_6] : memref<1x32xf32, #tpu.memory_space<vmem>>, vector<1x32xf32>
    %c0_7 = arith.constant 0 : index
    %c0_8 = arith.constant 0 : index
    %5 = vector.load %arg13[%c0_7, %c0_8] : memref<1x32xf32, #tpu.memory_space<vmem>>, vector<1x32xf32>
    %cst = arith.constant dense<0.000000e+00> : vector<8xf32>
    %6 = vector.multi_reduction <add>, %1, %cst [1] : vector<8x32xf32> to vector<8xf32>
    %7 = vector.shape_cast %6 : vector<8xf32> to vector<8x1xf32>
    %cst_9 = arith.constant 3.200000e+01 : f32
    %8 = vector.broadcast %cst_9 : f32 to vector<8x1xf32>
    %9 = arith.divf %7, %8 : vector<8x1xf32>
    %10 = vector.broadcast %9 : vector<8x1xf32> to vector<8x32xf32>
    %11 = arith.subf %1, %10 : vector<8x32xf32>
    %12 = arith.mulf %11, %11 : vector<8x32xf32>
    %cst_10 = arith.constant dense<0.000000e+00> : vector<8xf32>
    %13 = vector.multi_reduction <add>, %12, %cst_10 [1] : vector<8x32xf32> to vector<8xf32>
    %14 = vector.shape_cast %13 : vector<8xf32> to vector<8x1xf32>
    %cst_11 = arith.constant 3.200000e+01 : f32
    %15 = vector.broadcast %cst_11 : f32 to vector<8x1xf32>
    %16 = arith.divf %14, %15 : vector<8x1xf32>
    %17 = vector.broadcast %9 : vector<8x1xf32> to vector<8x32xf32>
    %18 = arith.subf %1, %17 : vector<8x32xf32>
    %cst_12 = arith.constant 9.99999974E-6 : f32
    %19 = vector.broadcast %cst_12 : f32 to vector<8x1xf32>
    %20 = arith.addf %16, %19 : vector<8x1xf32>
    %21 = math.rsqrt %20 : vector<8x1xf32>
    %22 = vector.broadcast %21 : vector<8x1xf32> to vector<8x32xf32>
    %23 = arith.mulf %18, %22 : vector<8x32xf32>
    %24 = vector.broadcast %4 : vector<1x32xf32> to vector<8x32xf32>
    %25 = arith.mulf %23, %24 : vector<8x32xf32>
    %26 = vector.broadcast %5 : vector<1x32xf32> to vector<8x32xf32>
    %27 = arith.addf %25, %26 : vector<8x32xf32>
    %28 = arith.truncf %27 : vector<8x32xf32> to vector<8x32xbf16>
    %cst_13 = arith.constant dense<0.000000e+00> : vector<8xf32>
    %29 = vector.multi_reduction <add>, %3, %cst_13 [1] : vector<8x32xf32> to vector<8xf32>
    %30 = vector.shape_cast %29 : vector<8xf32> to vector<8x1xf32>
    %cst_14 = arith.constant 3.200000e+01 : f32
    %31 = vector.broadcast %cst_14 : f32 to vector<8x1xf32>
    %32 = arith.divf %30, %31 : vector<8x1xf32>
    %33 = vector.broadcast %32 : vector<8x1xf32> to vector<8x32xf32>
    %34 = arith.subf %3, %33 : vector<8x32xf32>
    %35 = arith.mulf %34, %34 : vector<8x32xf32>
    %cst_15 = arith.constant dense<0.000000e+00> : vector<8xf32>
    %36 = vector.multi_reduction <add>, %35, %cst_15 [1] : vector<8x32xf32> to vector<8xf32>
    %37 = vector.shape_cast %36 : vector<8xf32> to vector<8x1xf32>
    %cst_16 = arith.constant 3.200000e+01 : f32
    %38 = vector.broadcast %cst_16 : f32 to vector<8x1xf32>
    %39 = arith.divf %37, %38 : vector<8x1xf32>
    %40 = vector.broadcast %32 : vector<8x1xf32> to vector<8x32xf32>
    %41 = arith.subf %3, %40 : vector<8x32xf32>
    %cst_17 = arith.constant 9.99999974E-6 : f32
    %42 = vector.broadcast %cst_17 : f32 to vector<8x1xf32>
    %43 = arith.addf %39, %42 : vector<8x1xf32>
    %44 = math.rsqrt %43 : vector<8x1xf32>
    %45 = vector.broadcast %44 : vector<8x1xf32> to vector<8x32xf32>
    %46 = arith.mulf %41, %45 : vector<8x32xf32>
    %47 = vector.broadcast %4 : vector<1x32xf32> to vector<8x32xf32>
    %48 = arith.mulf %46, %47 : vector<8x32xf32>
    %49 = vector.broadcast %5 : vector<1x32xf32> to vector<8x32xf32>
    %50 = arith.addf %48, %49 : vector<8x32xf32>
    %51 = arith.truncf %50 : vector<8x32xf32> to vector<8x32xbf16>
    %c0_18 = arith.constant 0 : index
    %c0_19 = arith.constant 0 : index
    %52 = vector.load %arg4[%c0_18, %c0_19] : memref<32x32xbf16, #tpu.memory_space<vmem>>, vector<32x32xbf16>
    %cst_20 = arith.constant dense<0.000000e+00> : vector<8x32xf32>
    %53 = tpu.matmul %28, %52, %cst_20 {dimension_numbers = #tpu.dot_dimension_numbers<[1], [0], [0], [1], [0, 0, 1, 1], [], []>} : vector<8x32xbf16>, vector<32x32xbf16>, vector<8x32xf32> -> vector<8x32xf32>
    %c0_21 = arith.constant 0 : index
    %c0_22 = arith.constant 0 : index
    %54 = vector.load %arg5[%c0_21, %c0_22] : memref<1x32xf32, #tpu.memory_space<vmem>>, vector<1x32xf32>
    %55 = vector.broadcast %54 : vector<1x32xf32> to vector<8x32xf32>
    %56 = arith.addf %53, %55 : vector<8x32xf32>
    %c0_23 = arith.constant 0 : index
    %c0_24 = arith.constant 0 : index
    %57 = vector.load %arg6[%c0_23, %c0_24] : memref<32x32xbf16, #tpu.memory_space<vmem>>, vector<32x32xbf16>
    %cst_25 = arith.constant dense<0.000000e+00> : vector<8x32xf32>
    %58 = tpu.matmul %51, %57, %cst_25 {dimension_numbers = #tpu.dot_dimension_numbers<[1], [0], [0], [1], [0, 0, 1, 1], [], []>} : vector<8x32xbf16>, vector<32x32xbf16>, vector<8x32xf32> -> vector<8x32xf32>
    %c0_26 = arith.constant 0 : index
    %c0_27 = arith.constant 0 : index
    %59 = vector.load %arg7[%c0_26, %c0_27] : memref<1x32xf32, #tpu.memory_space<vmem>>, vector<1x32xf32>
    %60 = vector.broadcast %59 : vector<1x32xf32> to vector<8x32xf32>
    %61 = arith.addf %58, %60 : vector<8x32xf32>
    %c0_28 = arith.constant 0 : index
    %c0_29 = arith.constant 0 : index
    %62 = vector.load %arg8[%c0_28, %c0_29] : memref<32x32xbf16, #tpu.memory_space<vmem>>, vector<32x32xbf16>
    %cst_30 = arith.constant dense<0.000000e+00> : vector<8x32xf32>
    %63 = tpu.matmul %51, %62, %cst_30 {dimension_numbers = #tpu.dot_dimension_numbers<[1], [0], [0], [1], [0, 0, 1, 1], [], []>} : vector<8x32xbf16>, vector<32x32xbf16>, vector<8x32xf32> -> vector<8x32xf32>
    %c0_31 = arith.constant 0 : index
    %c0_32 = arith.constant 0 : index
    %64 = vector.load %arg9[%c0_31, %c0_32] : memref<1x32xf32, #tpu.memory_space<vmem>>, vector<1x32xf32>
    %65 = vector.broadcast %64 : vector<1x32xf32> to vector<8x32xf32>
    %66 = arith.addf %63, %65 : vector<8x32xf32>
    %67 = arith.truncf %56 : vector<8x32xf32> to vector<8x32xbf16>
    %68 = arith.truncf %61 : vector<8x32xf32> to vector<8x32xbf16>
    %69 = arith.truncf %66 : vector<8x32xf32> to vector<8x32xbf16>
    %c0_33 = arith.constant 0 : index
    %c0_34 = arith.constant 0 : index
    %70 = vector.load %arg10[%c0_33, %c0_34] : memref<32x32xbf16, #tpu.memory_space<vmem>>, vector<32x32xbf16>
    %cst_35 = arith.constant 0.000000e+00 : f32
    %71 = vector.broadcast %cst_35 : f32 to vector<8x32xf32>
    %72 = vector.extract_strided_slice %67 {offsets = [0, 0], sizes = [8, 8], strides = [1, 1]} : vector<8x32xbf16> to vector<8x8xbf16>
    %73 = vector.extract_strided_slice %68 {offsets = [0, 0], sizes = [8, 8], strides = [1, 1]} : vector<8x32xbf16> to vector<8x8xbf16>
    %74 = vector.extract_strided_slice %69 {offsets = [0, 0], sizes = [8, 8], strides = [1, 1]} : vector<8x32xbf16> to vector<8x8xbf16>
    %cst_36 = arith.constant dense<0.000000e+00> : vector<8x8xf32>
    %75 = tpu.matmul %72, %73, %cst_36 {dimension_numbers = #tpu.dot_dimension_numbers<[1], [1], [0], [0], [0, 0, 1, 0], [], []>} : vector<8x8xbf16>, vector<8x8xbf16>, vector<8x8xf32> -> vector<8x8xf32>
    %cst_37 = arith.constant 0.353553385 : f32
    %76 = vector.broadcast %cst_37 : f32 to vector<8x8xf32>
    %77 = arith.mulf %75, %76 : vector<8x8xf32>
    %cst_38 = arith.constant dense<0xFF800000> : vector<8xf32>
    %78 = vector.multi_reduction <maximumf>, %77, %cst_38 [1] : vector<8x8xf32> to vector<8xf32>
    %79 = vector.shape_cast %78 : vector<8xf32> to vector<8x1xf32>
    %80 = vector.broadcast %79 : vector<8x1xf32> to vector<8x8xf32>
    %81 = arith.subf %77, %80 : vector<8x8xf32>
    %82 = math.exp %81 : vector<8x8xf32>
    %cst_39 = arith.constant dense<0.000000e+00> : vector<8xf32>
    %83 = vector.multi_reduction <add>, %82, %cst_39 [1] : vector<8x8xf32> to vector<8xf32>
    %84 = vector.shape_cast %83 : vector<8xf32> to vector<8x1xf32>
    %85 = tpu.reciprocal %84 {approx = true} : vector<8x1xf32> -> vector<8x1xf32>
    %86 = arith.truncf %82 : vector<8x8xf32> to vector<8x8xbf16>
    %cst_40 = arith.constant dense<0.000000e+00> : vector<8x8xf32>
    %87 = tpu.matmul %86, %74, %cst_40 {dimension_numbers = #tpu.dot_dimension_numbers<[1], [0], [0], [1], [0, 0, 1, 1], [], []>} : vector<8x8xbf16>, vector<8x8xbf16>, vector<8x8xf32> -> vector<8x8xf32>
    %88 = vector.broadcast %85 : vector<8x1xf32> to vector<8x8xf32>
    %89 = arith.mulf %87, %88 : vector<8x8xf32>
    %90 = arith.truncf %89 : vector<8x8xf32> to vector<8x8xbf16>
    %91 = vector.extract_strided_slice %70 {offsets = [0, 0], sizes = [8, 32], strides = [1, 1]} : vector<32x32xbf16> to vector<8x32xbf16>
    %cst_41 = arith.constant dense<0.000000e+00> : vector<8x32xf32>
    %92 = tpu.matmul %90, %91, %cst_41 {dimension_numbers = #tpu.dot_dimension_numbers<[1], [0], [0], [1], [0, 0, 1, 1], [], []>} : vector<8x8xbf16>, vector<8x32xbf16>, vector<8x32xf32> -> vector<8x32xf32>
    %93 = arith.addf %71, %92 : vector<8x32xf32>
    %94 = vector.extract_strided_slice %67 {offsets = [0, 8], sizes = [8, 8], strides = [1, 1]} : vector<8x32xbf16> to vector<8x8xbf16>
    %95 = vector.extract_strided_slice %68 {offsets = [0, 8], sizes = [8, 8], strides = [1, 1]} : vector<8x32xbf16> to vector<8x8xbf16>
    %96 = vector.extract_strided_slice %69 {offsets = [0, 8], sizes = [8, 8], strides = [1, 1]} : vector<8x32xbf16> to vector<8x8xbf16>
    %cst_42 = arith.constant dense<0.000000e+00> : vector<8x8xf32>
    %97 = tpu.matmul %94, %95, %cst_42 {dimension_numbers = #tpu.dot_dimension_numbers<[1], [1], [0], [0], [0, 0, 1, 0], [], []>} : vector<8x8xbf16>, vector<8x8xbf16>, vector<8x8xf32> -> vector<8x8xf32>
    %cst_43 = arith.constant 0.353553385 : f32
    %98 = vector.broadcast %cst_43 : f32 to vector<8x8xf32>
    %99 = arith.mulf %97, %98 : vector<8x8xf32>
    %cst_44 = arith.constant dense<0xFF800000> : vector<8xf32>
    %100 = vector.multi_reduction <maximumf>, %99, %cst_44 [1] : vector<8x8xf32> to vector<8xf32>
    %101 = vector.shape_cast %100 : vector<8xf32> to vector<8x1xf32>
    %102 = vector.broadcast %101 : vector<8x1xf32> to vector<8x8xf32>
    %103 = arith.subf %99, %102 : vector<8x8xf32>
    %104 = math.exp %103 : vector<8x8xf32>
    %cst_45 = arith.constant dense<0.000000e+00> : vector<8xf32>
    %105 = vector.multi_reduction <add>, %104, %cst_45 [1] : vector<8x8xf32> to vector<8xf32>
    %106 = vector.shape_cast %105 : vector<8xf32> to vector<8x1xf32>
    %107 = tpu.reciprocal %106 {approx = true} : vector<8x1xf32> -> vector<8x1xf32>
    %108 = arith.truncf %104 : vector<8x8xf32> to vector<8x8xbf16>
    %cst_46 = arith.constant dense<0.000000e+00> : vector<8x8xf32>
    %109 = tpu.matmul %108, %96, %cst_46 {dimension_numbers = #tpu.dot_dimension_numbers<[1], [0], [0], [1], [0, 0, 1, 1], [], []>} : vector<8x8xbf16>, vector<8x8xbf16>, vector<8x8xf32> -> vector<8x8xf32>
    %110 = vector.broadcast %107 : vector<8x1xf32> to vector<8x8xf32>
    %111 = arith.mulf %109, %110 : vector<8x8xf32>
    %112 = arith.truncf %111 : vector<8x8xf32> to vector<8x8xbf16>
    %113 = vector.extract_strided_slice %70 {offsets = [8, 0], sizes = [8, 32], strides = [1, 1]} : vector<32x32xbf16> to vector<8x32xbf16>
    %cst_47 = arith.constant dense<0.000000e+00> : vector<8x32xf32>
    %114 = tpu.matmul %112, %113, %cst_47 {dimension_numbers = #tpu.dot_dimension_numbers<[1], [0], [0], [1], [0, 0, 1, 1], [], []>} : vector<8x8xbf16>, vector<8x32xbf16>, vector<8x32xf32> -> vector<8x32xf32>
    %115 = arith.addf %93, %114 : vector<8x32xf32>
    %116 = vector.extract_strided_slice %67 {offsets = [0, 16], sizes = [8, 8], strides = [1, 1]} : vector<8x32xbf16> to vector<8x8xbf16>
    %117 = vector.extract_strided_slice %68 {offsets = [0, 16], sizes = [8, 8], strides = [1, 1]} : vector<8x32xbf16> to vector<8x8xbf16>
    %118 = vector.extract_strided_slice %69 {offsets = [0, 16], sizes = [8, 8], strides = [1, 1]} : vector<8x32xbf16> to vector<8x8xbf16>
    %cst_48 = arith.constant dense<0.000000e+00> : vector<8x8xf32>
    %119 = tpu.matmul %116, %117, %cst_48 {dimension_numbers = #tpu.dot_dimension_numbers<[1], [1], [0], [0], [0, 0, 1, 0], [], []>} : vector<8x8xbf16>, vector<8x8xbf16>, vector<8x8xf32> -> vector<8x8xf32>
    %cst_49 = arith.constant 0.353553385 : f32
    %120 = vector.broadcast %cst_49 : f32 to vector<8x8xf32>
    %121 = arith.mulf %119, %120 : vector<8x8xf32>
    %cst_50 = arith.constant dense<0xFF800000> : vector<8xf32>
    %122 = vector.multi_reduction <maximumf>, %121, %cst_50 [1] : vector<8x8xf32> to vector<8xf32>
    %123 = vector.shape_cast %122 : vector<8xf32> to vector<8x1xf32>
    %124 = vector.broadcast %123 : vector<8x1xf32> to vector<8x8xf32>
    %125 = arith.subf %121, %124 : vector<8x8xf32>
    %126 = math.exp %125 : vector<8x8xf32>
    %cst_51 = arith.constant dense<0.000000e+00> : vector<8xf32>
    %127 = vector.multi_reduction <add>, %126, %cst_51 [1] : vector<8x8xf32> to vector<8xf32>
    %128 = vector.shape_cast %127 : vector<8xf32> to vector<8x1xf32>
    %129 = tpu.reciprocal %128 {approx = true} : vector<8x1xf32> -> vector<8x1xf32>
    %130 = arith.truncf %126 : vector<8x8xf32> to vector<8x8xbf16>
    %cst_52 = arith.constant dense<0.000000e+00> : vector<8x8xf32>
    %131 = tpu.matmul %130, %118, %cst_52 {dimension_numbers = #tpu.dot_dimension_numbers<[1], [0], [0], [1], [0, 0, 1, 1], [], []>} : vector<8x8xbf16>, vector<8x8xbf16>, vector<8x8xf32> -> vector<8x8xf32>
    %132 = vector.broadcast %129 : vector<8x1xf32> to vector<8x8xf32>
    %133 = arith.mulf %131, %132 : vector<8x8xf32>
    %134 = arith.truncf %133 : vector<8x8xf32> to vector<8x8xbf16>
    %135 = vector.extract_strided_slice %70 {offsets = [16, 0], sizes = [8, 32], strides = [1, 1]} : vector<32x32xbf16> to vector<8x32xbf16>
    %cst_53 = arith.constant dense<0.000000e+00> : vector<8x32xf32>
    %136 = tpu.matmul %134, %135, %cst_53 {dimension_numbers = #tpu.dot_dimension_numbers<[1], [0], [0], [1], [0, 0, 1, 1], [], []>} : vector<8x8xbf16>, vector<8x32xbf16>, vector<8x32xf32> -> vector<8x32xf32>
    %137 = arith.addf %115, %136 : vector<8x32xf32>
    %138 = vector.extract_strided_slice %67 {offsets = [0, 24], sizes = [8, 8], strides = [1, 1]} : vector<8x32xbf16> to vector<8x8xbf16>
    %139 = vector.extract_strided_slice %68 {offsets = [0, 24], sizes = [8, 8], strides = [1, 1]} : vector<8x32xbf16> to vector<8x8xbf16>
    %140 = vector.extract_strided_slice %69 {offsets = [0, 24], sizes = [8, 8], strides = [1, 1]} : vector<8x32xbf16> to vector<8x8xbf16>
    %cst_54 = arith.constant dense<0.000000e+00> : vector<8x8xf32>
    %141 = tpu.matmul %138, %139, %cst_54 {dimension_numbers = #tpu.dot_dimension_numbers<[1], [1], [0], [0], [0, 0, 1, 0], [], []>} : vector<8x8xbf16>, vector<8x8xbf16>, vector<8x8xf32> -> vector<8x8xf32>
    %cst_55 = arith.constant 0.353553385 : f32
    %142 = vector.broadcast %cst_55 : f32 to vector<8x8xf32>
    %143 = arith.mulf %141, %142 : vector<8x8xf32>
    %cst_56 = arith.constant dense<0xFF800000> : vector<8xf32>
    %144 = vector.multi_reduction <maximumf>, %143, %cst_56 [1] : vector<8x8xf32> to vector<8xf32>
    %145 = vector.shape_cast %144 : vector<8xf32> to vector<8x1xf32>
    %146 = vector.broadcast %145 : vector<8x1xf32> to vector<8x8xf32>
    %147 = arith.subf %143, %146 : vector<8x8xf32>
    %148 = math.exp %147 : vector<8x8xf32>
    %cst_57 = arith.constant dense<0.000000e+00> : vector<8xf32>
    %149 = vector.multi_reduction <add>, %148, %cst_57 [1] : vector<8x8xf32> to vector<8xf32>
    %150 = vector.shape_cast %149 : vector<8xf32> to vector<8x1xf32>
    %151 = tpu.reciprocal %150 {approx = true} : vector<8x1xf32> -> vector<8x1xf32>
    %152 = arith.truncf %148 : vector<8x8xf32> to vector<8x8xbf16>
    %cst_58 = arith.constant dense<0.000000e+00> : vector<8x8xf32>
    %153 = tpu.matmul %152, %140, %cst_58 {dimension_numbers = #tpu.dot_dimension_numbers<[1], [0], [0], [1], [0, 0, 1, 1], [], []>} : vector<8x8xbf16>, vector<8x8xbf16>, vector<8x8xf32> -> vector<8x8xf32>
    %154 = vector.broadcast %151 : vector<8x1xf32> to vector<8x8xf32>
    %155 = arith.mulf %153, %154 : vector<8x8xf32>
    %156 = arith.truncf %155 : vector<8x8xf32> to vector<8x8xbf16>
    %157 = vector.extract_strided_slice %70 {offsets = [24, 0], sizes = [8, 32], strides = [1, 1]} : vector<32x32xbf16> to vector<8x32xbf16>
    %cst_59 = arith.constant dense<0.000000e+00> : vector<8x32xf32>
    %158 = tpu.matmul %156, %157, %cst_59 {dimension_numbers = #tpu.dot_dimension_numbers<[1], [0], [0], [1], [0, 0, 1, 1], [], []>} : vector<8x8xbf16>, vector<8x32xbf16>, vector<8x32xf32> -> vector<8x32xf32>
    %159 = arith.addf %137, %158 : vector<8x32xf32>
    %160 = arith.addf %1, %159 : vector<8x32xf32>
    %c0_60 = arith.constant 0 : index
    %c0_61 = arith.constant 0 : index
    %161 = vector.load %arg11[%c0_60, %c0_61] : memref<1x32xf32, #tpu.memory_space<vmem>>, vector<1x32xf32>
    %162 = vector.broadcast %161 : vector<1x32xf32> to vector<8x32xf32>
    %163 = arith.addf %160, %162 : vector<8x32xf32>
    %c0_62 = arith.constant 0 : index
    %c0_63 = arith.constant 0 : index
    %164 = vector.load %arg14[%c0_62, %c0_63] : memref<1x32xf32, #tpu.memory_space<vmem>>, vector<1x32xf32>
    %c0_64 = arith.constant 0 : index
    %c0_65 = arith.constant 0 : index
    %165 = vector.load %arg15[%c0_64, %c0_65] : memref<1x32xf32, #tpu.memory_space<vmem>>, vector<1x32xf32>
    %cst_66 = arith.constant dense<0.000000e+00> : vector<8xf32>
    %166 = vector.multi_reduction <add>, %163, %cst_66 [1] : vector<8x32xf32> to vector<8xf32>
    %167 = vector.shape_cast %166 : vector<8xf32> to vector<8x1xf32>
    %cst_67 = arith.constant 3.200000e+01 : f32
    %168 = vector.broadcast %cst_67 : f32 to vector<8x1xf32>
    %169 = arith.divf %167, %168 : vector<8x1xf32>
    %170 = vector.broadcast %169 : vector<8x1xf32> to vector<8x32xf32>
    %171 = arith.subf %163, %170 : vector<8x32xf32>
    %172 = arith.mulf %171, %171 : vector<8x32xf32>
    %cst_68 = arith.constant dense<0.000000e+00> : vector<8xf32>
    %173 = vector.multi_reduction <add>, %172, %cst_68 [1] : vector<8x32xf32> to vector<8xf32>
    %174 = vector.shape_cast %173 : vector<8xf32> to vector<8x1xf32>
    %cst_69 = arith.constant 3.200000e+01 : f32
    %175 = vector.broadcast %cst_69 : f32 to vector<8x1xf32>
    %176 = arith.divf %174, %175 : vector<8x1xf32>
    %177 = vector.broadcast %169 : vector<8x1xf32> to vector<8x32xf32>
    %178 = arith.subf %163, %177 : vector<8x32xf32>
    %cst_70 = arith.constant 9.99999974E-6 : f32
    %179 = vector.broadcast %cst_70 : f32 to vector<8x1xf32>
    %180 = arith.addf %176, %179 : vector<8x1xf32>
    %181 = math.rsqrt %180 : vector<8x1xf32>
    %182 = vector.broadcast %181 : vector<8x1xf32> to vector<8x32xf32>
    %183 = arith.mulf %178, %182 : vector<8x32xf32>
    %184 = vector.broadcast %164 : vector<1x32xf32> to vector<8x32xf32>
    %185 = arith.mulf %183, %184 : vector<8x32xf32>
    %186 = vector.broadcast %165 : vector<1x32xf32> to vector<8x32xf32>
    %187 = arith.addf %185, %186 : vector<8x32xf32>
    %188 = arith.truncf %187 : vector<8x32xf32> to vector<8x32xbf16>
    %c0_71 = arith.constant 0 : index
    %c0_72 = arith.constant 0 : index
    %189 = vector.load %arg16[%c0_71, %c0_72] : memref<32x64xbf16, #tpu.memory_space<vmem>>, vector<32x64xbf16>
    %cst_73 = arith.constant dense<0.000000e+00> : vector<8x64xf32>
    %190 = tpu.matmul %188, %189, %cst_73 {dimension_numbers = #tpu.dot_dimension_numbers<[1], [0], [0], [1], [0, 0, 1, 1], [], []>} : vector<8x32xbf16>, vector<32x64xbf16>, vector<8x64xf32> -> vector<8x64xf32>
    %c0_74 = arith.constant 0 : index
    %c0_75 = arith.constant 0 : index
    %191 = vector.load %arg17[%c0_74, %c0_75] : memref<1x64xf32, #tpu.memory_space<vmem>>, vector<1x64xf32>
    %192 = vector.broadcast %191 : vector<1x64xf32> to vector<8x64xf32>
    %193 = arith.addf %190, %192 : vector<8x64xf32>
    %cst_76 = arith.constant 0.000000e+00 : f32
    %194 = vector.broadcast %cst_76 : f32 to vector<8x64xf32>
    %195 = arith.maximumf %193, %194 : vector<8x64xf32>
    %196 = arith.truncf %195 : vector<8x64xf32> to vector<8x64xbf16>
    %c0_77 = arith.constant 0 : index
    %c0_78 = arith.constant 0 : index
    %197 = vector.load %arg18[%c0_77, %c0_78] : memref<64x32xbf16, #tpu.memory_space<vmem>>, vector<64x32xbf16>
    %cst_79 = arith.constant dense<0.000000e+00> : vector<8x32xf32>
    %198 = tpu.matmul %196, %197, %cst_79 {dimension_numbers = #tpu.dot_dimension_numbers<[1], [0], [0], [1], [0, 0, 1, 1], [], []>} : vector<8x64xbf16>, vector<64x32xbf16>, vector<8x32xf32> -> vector<8x32xf32>
    %c0_80 = arith.constant 0 : index
    %c0_81 = arith.constant 0 : index
    %199 = vector.load %arg19[%c0_80, %c0_81] : memref<1x32xf32, #tpu.memory_space<vmem>>, vector<1x32xf32>
    %200 = vector.broadcast %199 : vector<1x32xf32> to vector<8x32xf32>
    %201 = arith.addf %198, %200 : vector<8x32xf32>
    %202 = arith.addf %163, %201 : vector<8x32xf32>
    %c0_82 = arith.constant 0 : index
    %c0_83 = arith.constant 0 : index
    %c0_84 = arith.constant 0 : index
    %203 = vector.load %arg20[%c0_82, %c0_83, %c0_84] : memref<1x8x32xf32, #tpu.memory_space<vmem>>, vector<1x8x32xf32>
    %204 = vector.shape_cast %203 : vector<1x8x32xf32> to vector<8x32xf32>
    %205 = vector.shape_cast %202 : vector<8x32xf32> to vector<1x8x32xf32>
    tpu.vector_store %arg20[%c0_82, %c0_83, %c0_84], %205 {strides = array<i32>} : memref<1x8x32xf32, #tpu.memory_space<vmem>>, vector<1x8x32xf32>,
    return
  }
  func.func @transform_0(%arg0: i32, %arg1: i32) -> (i32, i32, i32) {
    %c0_i32 = arith.constant 0 : i32
    %c0_i32_0 = arith.constant 0 : i32
    return %arg0, %arg1, %c0_i32 : i32, i32, i32
  }
  func.func @transform_1(%arg0: i32, %arg1: i32) -> (i32, i32, i32) {
    %c0_i32 = arith.constant 0 : i32
    %c0_i32_0 = arith.constant 0 : i32
    %c0_i32_1 = arith.constant 0 : i32
    return %arg0, %c0_i32, %c0_i32_0 : i32, i32, i32
  }
  func.func @transform_2(%arg0: i32, %arg1: i32) -> (i32, i32) {
    %c0_i32 = arith.constant 0 : i32
    %c0_i32_0 = arith.constant 0 : i32
    %c0_i32_1 = arith.constant 0 : i32
    return %c0_i32, %c0_i32_0 : i32, i32
  }
  func.func @transform_3(%arg0: i32, %arg1: i32) -> (i32, i32) {
    %c0_i32 = arith.constant 0 : i32
    %c0_i32_0 = arith.constant 0 : i32
    %c0_i32_1 = arith.constant 0 : i32
    return %c0_i32, %c0_i32_0 : i32, i32
  }
  func.func @transform_4(%arg0: i32, %arg1: i32) -> (i32, i32) {
    %c0_i32 = arith.constant 0 : i32
    %c0_i32_0 = arith.constant 0 : i32
    %c0_i32_1 = arith.constant 0 : i32
    return %c0_i32, %c0_i32_0 : i32, i32
  }
  func.func @transform_5(%arg0: i32, %arg1: i32) -> (i32, i32) {
    %c0_i32 = arith.constant 0 : i32
    %c0_i32_0 = arith.constant 0 : i32
    %c0_i32_1 = arith.constant 0 : i32
    return %c0_i32, %c0_i32_0 : i32, i32
  }
  func.func @transform_6(%arg0: i32, %arg1: i32) -> (i32, i32) {
    %c0_i32 = arith.constant 0 : i32
    %c0_i32_0 = arith.constant 0 : i32
    %c0_i32_1 = arith.constant 0 : i32
    return %c0_i32, %c0_i32_0 : i32, i32
  }
  func.func @transform_7(%arg0: i32, %arg1: i32) -> (i32, i32) {
    %c0_i32 = arith.constant 0 : i32
    %c0_i32_0 = arith.constant 0 : i32
    %c0_i32_1 = arith.constant 0 : i32
    return %c0_i32, %c0_i32_0 : i32, i32
  }
  func.func @transform_8(%arg0: i32, %arg1: i32) -> (i32, i32) {
    %c0_i32 = arith.constant 0 : i32
    %c0_i32_0 = arith.constant 0 : i32
    %c0_i32_1 = arith.constant 0 : i32
    return %c0_i32, %c0_i32_0 : i32, i32
  }
  func.func @transform_9(%arg0: i32, %arg1: i32) -> (i32, i32) {
    %c0_i32 = arith.constant 0 : i32
    %c0_i32_0 = arith.constant 0 : i32
    %c0_i32_1 = arith.constant 0 : i32
    return %c0_i32, %c0_i32_0 : i32, i32
  }
  func.func @transform_10(%arg0: i32, %arg1: i32) -> (i32, i32) {
    %c0_i32 = arith.constant 0 : i32
    %c0_i32_0 = arith.constant 0 : i32
    %c0_i32_1 = arith.constant 0 : i32
    return %c0_i32, %c0_i32_0 : i32, i32
  }
  func.func @transform_11(%arg0: i32, %arg1: i32) -> (i32, i32) {
    %c0_i32 = arith.constant 0 : i32
    %c0_i32_0 = arith.constant 0 : i32
    %c0_i32_1 = arith.constant 0 : i32
    return %c0_i32, %c0_i32_0 : i32, i32
  }
  func.func @transform_12(%arg0: i32, %arg1: i32) -> (i32, i32) {
    %c0_i32 = arith.constant 0 : i32
    %c0_i32_0 = arith.constant 0 : i32
    %c0_i32_1 = arith.constant 0 : i32
    return %c0_i32, %c0_i32_0 : i32, i32
  }
  func.func @transform_13(%arg0: i32, %arg1: i32) -> (i32, i32) {
    %c0_i32 = arith.constant 0 : i32
    %c0_i32_0 = arith.constant 0 : i32
    %c0_i32_1 = arith.constant 0 : i32
    return %c0_i32, %c0_i32_0 : i32, i32
  }
  func.func @transform_14(%arg0: i32, %arg1: i32) -> (i32, i32) {
    %c0_i32 = arith.constant 0 : i32
    %c0_i32_0 = arith.constant 0 : i32
    %c0_i32_1 = arith.constant 0 : i32
    return %c0_i32, %c0_i32_0 : i32, i32
  }
  func.func @transform_15(%arg0: i32, %arg1: i32) -> (i32, i32) {
    %c0_i32 = arith.constant 0 : i32
    %c0_i32_0 = arith.constant 0 : i32
    %c0_i32_1 = arith.constant 0 : i32
    return %c0_i32, %c0_i32_0 : i32, i32
  }
  func.func @transform_16(%arg0: i32, %arg1: i32) -> (i32, i32) {
    %c0_i32 = arith.constant 0 : i32
    %c0_i32_0 = arith.constant 0 : i32
    %c0_i32_1 = arith.constant 0 : i32
    return %c0_i32, %c0_i32_0 : i32, i32
  }
  func.func @transform_17(%arg0: i32, %arg1: i32) -> (i32, i32) {
    %c0_i32 = arith.constant 0 : i32
    %c0_i32_0 = arith.constant 0 : i32
    %c0_i32_1 = arith.constant 0 : i32
    return %c0_i32, %c0_i32_0 : i32, i32
  }
  func.func @transform_18(%arg0: i32, %arg1: i32) -> (i32, i32, i32) {
    %c0_i32 = arith.constant 0 : i32
    %c0_i32_0 = arith.constant 0 : i32
    return %arg0, %arg1, %c0_i32 : i32, i32, i32
  }
}

</mosaic_0001>

<bundles_post_ra>
// kernel: tpu_custom_call.1
= control target key start
LH: loop header
LB: loop body
LE: loop exit
PB: predicated region body
PF: predicated region fallthrough
CT: control target
= control target key end

     0   :  { %s2267_s0 = inlined_call_operand.vmem [shape: f32[2,8,32], index: 0, kind: input, shape index: {}]   ;;  %s2268_s1 = inlined_call_operand.vmem [shape: f32[2,8,32], index: 1, kind: input, shape index: {}]   ;;  %s2269_s2 = inlined_call_operand.vmem [shape: bf16[32,32], index: 2, kind: input, shape index: {}]   ;;  %s2270_s3 = inlined_call_operand.vmem [shape: f32[1,32], index: 3, kind: input, shape index: {}]   ;;  %s2271_s4 = inlined_call_operand.hbm [shape: bf16[32,32], index: 4, kind: input, shape index: {}]   ;;  %s2272_s5 = inlined_call_operand.vmem [shape: f32[1,32], index: 5, kind: input, shape index: {}]   ;;  %s2273_s6 = inlined_call_operand.hbm [shape: bf16[32,32], index: 6, kind: input, shape index: {}]   ;;  %s2274_s7 = inlined_call_operand.vmem [shape: f32[1,32], index: 7, kind: input, shape index: {}]   ;;  %s2275_s8 = inlined_call_operand.hbm [shape: bf16[32,32], index: 8, kind: input, shape index: {}]   ;;  %s2276_s9 = inlined_call_operand.vmem [shape: f32[1,32], index: 9, kind: input, shape index: {}]   ;;  %s2277_s10 = inlined_call_operand.vmem [shape: f32[1,32], index: 10, kind: input, shape index: {}]   ;;  %s2278_s11 = inlined_call_operand.vmem [shape: f32[1,32], index: 11, kind: input, shape index: {}]   ;;  %s2279_s12 = inlined_call_operand.vmem [shape: f32[1,32], index: 12, kind: input, shape index: {}]   ;;  %s2280_s13 = inlined_call_operand.vmem [shape: f32[1,32], index: 13, kind: input, shape index: {}]   ;;  %s2281_s14 = inlined_call_operand.hbm [shape: bf16[32,64], index: 14, kind: input, shape index: {}]   ;;  %s2282_s15 = inlined_call_operand.vmem [shape: f32[1,64], index: 15, kind: input, shape index: {}]   ;;  %s2283_s16 = inlined_call_operand.vmem [shape: bf16[64,32], index: 16, kind: input, shape index: {}]   ;;  %s2284_s17 = inlined_call_operand.vmem [shape: f32[1,32], index: 17, kind: input, shape index: {}]   ;;  %s2285_s18 = inlined_call_operand.hbm [shape: f32[2,8,32], index: 18, kind: output, shape index: {}]  }
   0x1   :  { %2298 = sst [smem:[#allocation24_spill]] %s2267_s0 }
   0x2   :  { %2299 = sst [smem:[#allocation25_spill]] %s2268_s1 }
   0x3   :  { %2300 = sst [smem:[#allocation26_spill]] %s2269_s2 }
   0x4   :  { %2301 = sst [smem:[#allocation27_spill]] %s2273_s6 }
   0x5   :  { %2302 = sst [smem:[#allocation28_spill]] %s2282_s15 }
   0x6   :  { %2303 = sst [smem:[#allocation29_spill]] %s2284_s17 }
   0x7   :  { %2304 = sst [smem:[#allocation30_spill]] %s2285_s18 }
   0x8   :  { %23 = vsyncpa [#allocation3], 0 }
   0x9   :  { %24 = vsyncpa [#allocation6], 0 }
   0xa   :  { %25 = vsyncpa [#allocation9], 0 }
   0xb   :  { %26 = vsyncpa [#allocation4], 0 }
   0xc   :  { %28 = vsyncpa [#allocation4 + $0x1], 0  ;;  %s1999_s27 = smov 0   ;;  %s2001_s28 = smov 0  }
   0xd   :  { %s2003_s29 = smov 0   ;;  %s2005_s30 = smov 0  }
   0xe   :  { %s2007_s0 = smov 0   ;;  %s2009_s19 = smov 0  }
   0xf LB: > { %2305 = sst [smem:[#allocation15_spill]] %s1872_s27  ;;  %s1449_s1 = sadd.s32 4294967295, %s1892_s19   ;;  %s1892_s19 = sphi %s2009_s19, %s34_s19   ;;  %s1888_s0 = sphi %s2007_s0, %s2335_s0   ;;  %s1884_s30 = sphi %s2005_s30, %s2334_s30   ;;  %s1880_s29 = sphi %s2003_s29, %s2333_s29   ;;  %s1876_s28 = sphi %s2001_s28, %s2332_s28   ;;  %s1872_s27 = sphi %s1999_s27, %s2331_s27  }
  0x10   : > { %2306 = sst [smem:[#allocation16_spill]] %s1876_s28  ;;  %s1450_s20 = sadd.s32 4294967294, %s1892_s19  }
  0x11   : > { %2307 = sst [smem:[#allocation17_spill]] %s1880_s29  ;;  %s46_s21 = sadd.s32 1, %s1888_s0 }
  0x12   : > { %2308 = sst [smem:[#allocation18_spill]] %s1888_s0  ;;  %s445_s22 = sadd.s32 1, %s1880_s29 }
  0x13   : > { %2309 = sst [smem:[#allocation19_spill]] %s1892_s19  ;;  %p48_p0 = scmp.ge.s32.totalorder %s46_s21, 2 }
  0x14   : > { %p455_p1 = scmp.ne.s32.totalorder %s1880_s29, %s1876_s28  ;;  %p456_p2 = scmp.eq.s32.totalorder %s1449_s1, 1 }
  0x15   : > { %p461_p3 = scmp.ne.s32.totalorder %s1876_s28, %s1872_s27  ;;  %s2337_s21 = smov (%p48_p0, %s46_s21), 0 }
  0x16   : > { %2310 = sst [smem:[#allocation20_spill]] %s2337_s21  ;;  %p2039_p4 = por %p456_p2, %p455_p1 }
  0x17   : > { %p462_p5 = scmp.eq.s32.totalorder %s1450_s20, 1  ;;  %s440_s23 = ssub.s32 %s1888_s0, %s2337_s21 }
  0x18   : > { %s2311_s2 = scalar_select %p2039_p4, 1, 0 }
  0x19   : > { %p1451_p6 = scmp.ge.s32.totalorder %s1892_s19, 1  ;;  %p443_p7 = scmp.eq.s32.totalorder %s440_s23, 0 }
  0x1a   : > { %2312 = sst [smem:[#allocation21_spill]] %s2311_s2  ;;  %p2046_p8 = por %p462_p5, %p461_p3 }
  0x1b   : > { %p469_p9 = scmp.lt.s32.totalorder %s1892_s19, 3  ;;  %p2058_p11 = scmp.eq.s32.totalorder %s1449_s1, 0 }
  0x1c   : > { %s2313_s24 = scalar_select %p2046_p8, 1, 0 }
  0x1d   : > { %s2052_s25 = scalar_select %p443_p7, %s1880_s29, %s445_s22  }
  0x1e   : > { %2314 = sst [smem:[#allocation22_spill]] %s2313_s24  ;;  %p2054_p10 = pnand %p1451_p6, %p469_p9 }
  0x1f   : > { %2315 = sst [smem:[#allocation23_spill]] %s2052_s25  ;;  %s1894_s0 = smov [#allocation5]  }
  0x20   : > { %p1564_p12 = pneg %p2054_p10  ;;  %s2318_s6 = sld [smem:[#allocation27_spill]] }
  0x21   : > { %s505_s1 = sshll.u32 %s1894_s0, 4  ;;  %s1895_s25 = smov 64   ;;  %s506_s1 = int_to_ptr.vmem [resolvable:$true] %s505_s1 }
  0x22   : > { %p2069_p13 = pnand %p2058_p11, %p1564_p12  ;;  %s1896_s29 = smov 4  }
  0x23   : > { %s486_s20 = sshll.u32 %s2271_s4, 4  ;;  %s1897_s23 = smov [#allocation2]   ;;  %s487_s20 = int_to_ptr.hbm [resolvable:$true] %s486_s20 }
  0x24   : > { %s520_s17 = sshll.u32 %s2275_s8, 4  ;;  %s1898_s0 = smov [#allocation7]   ;;  %s521_s17 = int_to_ptr.hbm [resolvable:$true] %s520_s17 }
  0x25   : > { %s522_s15 = sshll.u32 %s1898_s0, 4  ;;  %s1899_s19 = smov [#allocation8]   ;;  %s523_s15 = int_to_ptr.vmem [resolvable:$true] %s522_s15 }
  0x26   : > { %s503_s21 = sshll.u32 %s2318_s6, 4  ;;  %s488_s6 = sshll.u32 %s1897_s23, 4  ;;  %s504_s21 = int_to_ptr.hbm [resolvable:$true] %s503_s21  ;;  %s489_s6 = int_to_ptr.vmem [resolvable:$true] %s488_s6 }
  0x27   : > { %1570 = dma.hbm_to_vmem [thread:$0]  (!%p2069_p13), %s504_s21, 256, %s506_s1, [#allocation6], %s1895_s25, %s1895_s25, %s1896_s29  }
  0x28   : > { %1567 = dma.hbm_to_vmem [thread:$0]  (!%p2069_p13), %s487_s20, 256, %s489_s6, [#allocation3], %s1895_s25, %s1895_s25, %s1896_s29  }
  0x29   : > { %s549_s1 = sshll.u32 %s2281_s14, 4  ;;  %s551_s24 = sshll.u32 %s1899_s19, 4  ;;  %s550_s1 = int_to_ptr.hbm [resolvable:$true] %s549_s1  ;;  %s552_s24 = int_to_ptr.vmem [resolvable:$true] %s551_s24 }
  0x2a   : > { %1573 = dma.hbm_to_vmem [thread:$0]  (!%p2069_p13), %s521_s17, 256, %s523_s15, [#allocation6], %s1895_s25, %s1895_s25, %s1896_s29  }
  0x2b   : > { %1576 = dma.hbm_to_vmem [thread:$0]  (!%p2069_p13), %s550_s1, 256, %s552_s24, [#allocation9], %s1895_s25, %s1895_s25, %s1896_s29  }
  0x2c   : > { %593 = sbr.rel (%p2054_p10) target bundleno = 1959 (0x7a7), region = 92 }
  0x31   : > { %1855 = dma.done.wait (%p2058_p11), [#allocation3], 256  }
  0x32   : > { %1857 = vsyncadd (%p2058_p11), [#allocation3], 4294967040 }
  0x33   : > { %1859 = dma.done.wait (%p2058_p11), [#allocation6], 512  }
  0x34   : > { %1861 = vsyncadd (%p2058_p11), [#allocation6], 4294966784 }
  0x35   : > { %1863 = dma.done.wait (%p2058_p11), [#allocation9], 256  }
  0x36   : > { %1865 = vsyncadd (%p2058_p11), [#allocation9], 4294967040  ;;  %p669_p0 = scmp.lt.s32.totalorder %s1884_s30, 1  ;;  %s2320_s28 = sld [smem:[#allocation25_spill]]  ;;  %vm685_vm0 = vcmask 261120   ;;  %v1900_v4 = vmov 32.0  }
  0x37   : > { %s2321_s26 = sld [smem:[#allocation24_spill]]  ;;  %1658 = vrcp.f32 %v1900_v4  ;;  %v1537_v21 = vld [vmem:[#allocation2 + $0x8] sm:$0xff]  ;;  %v1539_v22 = vld [vmem:[#allocation5 + $0x8] sm:$0xff]  ;;  %v1536_v23 = vld [vmem:[#allocation2] sm:$0xff]  ;;  %vm861_vm8 = vcmask 64512   ;;  %vm896_vm9 = vcmask 1043456  }
  0x38   : > { %s670_s6 = scalar_select %p669_p0, %s1884_s30, 1  ;;  %814 = vmatpush.bf16.msra.mxu1 %v1537_v21  ;;  %847 = vmatpush.bf16.msra.mxu2 %v1539_v22  ;;  %v1538_v24 = vld [vmem:[#allocation5] sm:$0xff]  ;;  %v1648_v41 = vld [vmem:[%s2277_s10] ss:$0 sm:$0xff]  ;;  %vm1289_vm13 = vcmask 523264  }
  0x39   : > { %s2322_s23 = sld [smem:[#allocation26_spill]]  ;;  %v1649_v44 = vld [vmem:[%s2278_s11] ss:$0 sm:$0xff]  ;;  %s1901_s25 = smov 120  }
  0x3a   : > { %s1463_s15 = sshll.u32 %s670_s6, 3  ;;  %v1650_v57 = vld [vmem:[%s2272_s5] ss:$0 sm:$0xff]  ;;  %s2323_s18 = sld [smem:[#allocation16_spill]] }
  0x3b   : > { %v1651_v61 = vld [vmem:[%s2274_s7] ss:$0 sm:$0xff]  ;;  %s2324_s27 = sld [smem:[#allocation28_spill]]  ;;  %s1531_s21 = sshll.u32 %s1884_s30, 3 }
  0x3c   : > { %s679_s29 = scalar_lea.vmem %s2320_s28, %s1463_s15  ;;  %815 = vmatpush.bf16.msra.mxu1 %v1536_v23  ;;  %848 = vmatpush.bf16.msra.mxu2 %v1538_v24  ;;  %v1652_v63 = vld [vmem:[%s2270_s3] ss:$0 sm:$0xff]  ;;  %s2325_s24 = sld [smem:[#allocation29_spill]] }
  0x3d   : > { %v682_v0 = vld [vmem:[%s679_s29] sm:$0xff]  ;;  %s675_s22 = scalar_lea.vmem %s2321_s26, %s1463_s15  ;;  %v1659_v5 = vpop.eup %1658  ;;  %s1902_s26 = smov 104  }
  0x3e   : > { %v724_v1 = vsel %vm685_vm0, %v682_v0, 0.0  ;;  %v2113_v2 = vld [vmem:[%s675_s22] sm:$0xff]  ;;  %v690_v6 = vmul.f32 32.0, %v1659_v5  ;;  %vm694_vm1 = vweird.f32 %v1659_v5  ;;  %s1903_s22 = smov 112   ;;  %s2326_s17 = sld [smem:[#allocation30_spill]] }
  0x3f   : > { %725 = vadd.xlane.f32.xlu0 %v724_v1  ;;  %v686_v3 = vsel %vm685_vm0, %v2113_v2, 0.0  ;;  %v1535_v25 = vld [vmem:[%s2322_s23 + $0x8] sm:$0xff]  ;;  %v1534_v27 = vld [vmem:[%s2322_s23] sm:$0xff] }
  0x40   : > { %v691_v7 = vsub.f32 1.0, %v690_v6  ;;  %778 = vmatpush.bf16.msra.mxu0 %v1535_v25  ;;  %v857_v22 = vld [vmem:[#allocation7] sm:$0xf]  ;;  %s666_s20 = sand.u32 1, %s2323_s18  }
  0x41   : > { %v1005_v23 = vsel %vm896_vm9, %v857_v22, 0  ;;  %s1462_s0 = sshll.u32 %s666_s20, 3  ;;  %s1309_s30 = scalar_lea.sflag [#allocation4], %s666_s20 }
  0x42   : > { %v692_v8 = vmul.f32 %v1659_v5, %v691_v7  ;;  %s668_s2 = scalar_lea.vmem [#allocation10], %s1462_s0 }
  0x44   : > { %v693_v9 = vadd.f32 %v1659_v5, %v692_v8  ;;  %779 = vmatpush.bf16.msra.mxu0 %v1534_v27  ;;  %s1320_s29 = scalar_lea.hbm %s2326_s17, %s1531_s21  ;;  %s1822_s0 = scalar_lea.hbm %s2326_s17, 16 }
  0x46   : > { %v2117_v10 = vsel %vm694_vm1, %v1659_v5, %v693_v9 }
  0x47   : > { %687 = vadd.xlane.f32.xlu0 %v686_v3 }
  0xb2   : > { %v726_v11 = vpop.xlane.xlu0 %725 }
  0xb3   : > { %v727_v12 = vmul.f32 %v726_v11, %v2117_v10 }
  0xb5   : > { %v728_v13 = vsub.f32 %v682_v0, %v727_v12 }
  0xb7   : > { %v729_v14 = vmul.f32 %v728_v13, %v728_v13 }
  0xb9   : > { %v730_v15 = vsel %vm685_vm0, %v729_v14, 0.0 }
  0xba   : > { %731 = vadd.xlane.f32.xlu1 %v730_v15  ;;  %v688_v16 = vpop.xlane.xlu0 %687 }
  0xbb   : > { %v696_v17 = vmul.f32 %v2117_v10, %v688_v16 }
  0xbd   : > { %v697_v18 = vsub.f32 %v2113_v2, %v696_v17 }
  0xbf   : > { %v698_v19 = vmul.f32 %v697_v18, %v697_v18 }
  0xc1   : > { %v699_v20 = vsel %vm685_vm0, %v698_v19, 0.0 }
  0xc2   : > { %700 = vadd.xlane.f32.xlu1 %v699_v20 }
 0x12d   : > { %v732_v26 = vpop.xlane.xlu1 %731 }
 0x12e   : > { %v733_v28 = vmul.f32 %v732_v26, %v2117_v10 }
 0x130   : > { %v734_v29 = vadd.f32 1e-05, %v733_v28 }
 0x132   : > { %1660 = vrsqrt.f32 %v734_v29  ;;  %vm741_vm3 = vweird.f32 %v734_v29 }
 0x135   : > { %v701_v30 = vpop.xlane.xlu1 %700 }
 0x136   : > { %v702_v31 = vmul.f32 %v701_v30, %v2117_v10 }
 0x138   : > { %v1661_v32 = vpop.eup %1660  ;;  %v703_v33 = vadd.f32 1e-05, %v702_v31 }
 0x139   : > { %v736_v34 = vmul.f32 %v1661_v32, %v734_v29  ;;  %vm742_vm2 = vweird.f32 %v1661_v32 }
 0x13a   : > { %1662 = vrsqrt.f32 %v703_v33  ;;  %vm743_vm4 = vmor %vm741_vm3, %vm742_vm2  ;;  %vm710_vm6 = vweird.f32 %v703_v33 }
 0x13b   : > { %v737_v35 = vmul.f32 %v1661_v32, %v736_v34 }
 0x13d   : > { %v738_v36 = vmul.f32 0.5, %v737_v35 }
 0x13f   : > { %v739_v37 = vsub.f32 1.5, %v738_v36 }
 0x140   : > { %v1663_v38 = vpop.eup %1662 }
 0x141   : > { %v740_v39 = vmul.f32 %v1661_v32, %v739_v37  ;;  %v705_v40 = vmul.f32 %v1663_v38, %v703_v33  ;;  %vm711_vm5 = vweird.f32 %v1663_v38 }
 0x142   : > { %vm712_vm7 = vmor %vm710_vm6, %vm711_vm5 }
 0x143   : > { %v744_v42 = vsel %vm743_vm4, %v1661_v32, %v740_v39  ;;  %v706_v43 = vmul.f32 %v1663_v38, %v705_v40 }
 0x144   : > { %v745_v45 = vmul.f32 %v744_v42, %v728_v13 }
 0x145   : > { %v707_v46 = vmul.f32 0.5, %v706_v43 }
 0x146   : > { %v746_v47 = vmul.f32 %v1648_v41, %v745_v45 }
 0x147   : > { %v708_v48 = vsub.f32 1.5, %v707_v46 }
 0x148   : > { %v747_v49 = vadd.f32 %v1649_v44, %v746_v47 }
 0x149   : > { %v709_v50 = vmul.f32 %v1663_v38, %v708_v48 }
 0x14a   : > { %v748_v51 = vpack.c.bf16 %v747_v49, %v747_v49 }
 0x14b   : > { %v713_v52 = vsel %vm712_vm7, %v1663_v38, %v709_v50 }
 0x14c   : > { %1482 = vmatmul.msk.bf16.vlgmr.msra.gmra.mxu1 %vm685_vm0, %v748_v51  ;;  %1491 = vmatmul.msk.bf16.vlgmr.msra.gmra.mxu2 %vm685_vm0, %v748_v51  ;;  %v714_v53 = vmul.f32 %v713_v52, %v697_v18 }
 0x14e   : > { %v718_v54 = vmul.f32 %v1648_v41, %v714_v53 }
 0x150   : > { %v722_v55 = vadd.f32 %v1649_v44, %v718_v54 }
 0x152   : > { %v723_v56 = vpack.c.bf16 %v722_v55, %v722_v55 }
 0x154   : > { %1473 = vmatmul.msk.bf16.vlgmr.msra.gmra.mxu0 %vm685_vm0, %v723_v56 }
 0x1c9   : > { %v817_v58 = vpop.f32.mrf.mxu1 }
 0x1ca   : > { %v818_v59 = vadd.f32 %v1650_v57, %v817_v58 }
 0x1cc   : > { %v855_v60 = vpack.c.bf16 %v818_v59, %v818_v59 }
 0x1ce   : > { %v866_v62 = vsel %vm861_vm8, %v855_v60, 0  ;;  %v921_v18 = vunpack.c.l.b16 %v855_v60 }
 0x1cf   : > { %v850_v0 = vpop.f32.mrf.mxu2  ;;  %875 = vmatpush.bf16.xpose.msra.mxu3 %v866_v62 }
 0x1d0   : > { %v851_v1 = vadd.f32 %v1651_v61, %v850_v0  ;;  %v922_v19 = vpack.c.b16 %v921_v18, %v921_v18 }
 0x1d1   : > { %v781_v3 = vpop.f32.mrf.mxu0  ;;  %v819_v4 = vpop.f32.mrf.mxu1 }
 0x1d2   : > { %v856_v5 = vpack.c.bf16 %v851_v1, %v851_v1  ;;  %v782_v6 = vadd.f32 %v1652_v63, %v781_v3 }
 0x1d4   : > { %v854_v7 = vpack.c.bf16 %v782_v6, %v782_v6  ;;  %v898_v8 = vsel %vm896_vm9, %v856_v5, 0  ;;  %v957_v20 = vunpack.c.l.b16 %v856_v5  ;;  %v858_v6 = vld [vmem:[#allocation7 + $0x4] sm:$0xf] }
 0x1d5   : > { %907 = vmatpush.bf16.msrb.mxu0 %v898_v8 }
 0x1d6   : > { %v916_v9 = vunpack.c.l.b16 %v854_v7  ;;  %1492 = vmatmul.msk.bf16.vlgmr.msra.gmra.mxu3 %vm861_vm8, %v854_v7  ;;  %v2157_v21 = vpack.c.b16 %v957_v20, %v957_v20  ;;  %v986_v7 = vsel %vm896_vm9, %v858_v6, 0 }
 0x1d7   : > { %v852_v11 = vpop.f32.mrf.mxu2  ;;  %995 = vmatpush.bf16.msrb.mxu3 %v986_v7 }
 0x1d8   : > { %v917_v12 = vpack.c.b16 %v916_v9, %v916_v9 }
 0x1d9   : > { %v783_v13 = vpop.f32.mrf.mxu0  ;;  %1014 = vmatpush.bf16.msra.mxu0 %v1005_v23 }
 0x1da   : > { %918 = vrot.lane.b32.xlu1 %v917_v12, %s1901_s25 }
 0x1e2   : > { %1098 = vrot.lane.b32.xlu1 %v917_v12, %s1902_s26 }
 0x24c   : > { %v919_v32 = vpop.permute.xlu1 %918 }
 0x254   : > { %v1099_v50 = vpop.permute.xlu1 %1098 }
 0x259   : > { %v877_v14 = vpop.f32.mrf.mxu3 }
 0x25a   : > { %v881_v15 = vmul.f32 0.35355338, %v877_v14 }
 0x25c   : > { %v882_v16 = vsel %vm861_vm8, %v881_v15, -inf }
 0x25d   : > { %883 = vmax.xlane.f32.xlu2 %v882_v16 }
 0x261   : > { %v879_v17 = vpop.f32.mrf.mxu3 }
 0x275   : > { %923 = vrot.lane.b32.xlu2 %v922_v19, %s1901_s25 }
 0x27d   : > { %1020 = vrot.lane.b32.xlu2 %v917_v12, %s1903_s22 }
 0x285   : > { %1100 = vrot.lane.b32.xlu2 %v922_v19, %s1902_s26 }
 0x28d   : > { %959 = vrot.lane.b32.xlu2 %v2157_v21, %s1901_s25  ;;  %s1322_s25 = sshll.u32 %s668_s2, 4  ;;  %s1323_s25 = int_to_ptr.vmem [resolvable:$true] %s1322_s25 }
 0x2d0   : > { %v884_v24 = vpop.xlane.xlu2 %883 }
 0x2d1   : > { %v885_v25 = vsub.f32 %v881_v15, %v884_v24 }
 0x2d3   : > { %v886_v26 = vmul.f32 1.442695, %v885_v25 }
 0x2d5   : > { %1664 = vpow2.f32 %v886_v26 }
 0x2d8   : > { %v924_v27 = vpop.permute.xlu2 %923 }
 0x2d9   : > { %v929_v28 = vsel %vm861_vm8, %v924_v27, 0 }
 0x2da   : > { %938 = vmatpush.bf16.xpose.msrb.mxu1 %v929_v28 }
 0x2db   : > { %v1665_v29 = vpop.eup %1664 }
 0x2dc   : > { %v888_v30 = vsel %vm861_vm8, %v1665_v29, 0.0  ;;  %v892_v31 = vpack.c.bf16 %v1665_v29, %v1665_v29  ;;  %v859_v29 = vld [vmem:[#allocation7 + $0x8] sm:$0xf] }
 0x2dd   : > { %889 = vadd.xlane.f32.xlu0 %v888_v30  ;;  %v1082_v30 = vsel %vm896_vm9, %v859_v29, 0 }
 0x2de   : > { %1493 = vmatmul.msk.bf16.vlgmr.msrb.gmra.mxu0 %vm861_vm8, %v892_v31  ;;  %1091 = vmatpush.bf16.msra.mxu3 %v1082_v30  ;;  %v860_v31 = vld [vmem:[#allocation7 + $0xc] sm:$0xf] }
 0x2e0   : > { %v1021_v33 = vpop.permute.xlu2 %1020 }
 0x2e1   : > { %1494 = vmatmul.msk.bf16.vlgmr.msrb.gmra.mxu1 %vm861_vm8, %v919_v32  ;;  %v1160_v32 = vsel %vm896_vm9, %v860_v31, 0 }
 0x2e8   : > { %v1101_v34 = vpop.permute.xlu2 %1100 }
 0x2e9   : > { %v1106_v35 = vsel %vm861_vm8, %v1101_v34, 0 }
 0x2ea   : > { %1115 = vmatpush.bf16.xpose.msrb.mxu0 %v1106_v35 }
 0x2f0   : > { %v960_v36 = vpop.permute.xlu2 %959 }
 0x2f1   : > { %1022 = vrot.lane.b32.xlu0 %v922_v19, %s1903_s22  ;;  %v965_v37 = vsel %vm896_vm9, %v960_v36, 0 }
 0x2f2   : > { %974 = vmatpush.bf16.msrb.mxu2 %v965_v37 }
 0x350   : > { %v890_v38 = vpop.xlane.xlu0 %889 }
 0x351   : > { %1666 = vrcp.f32 %v890_v38 }
 0x357   : > { %v1667_v39 = vpop.eup %1666 }
 0x35b   : > { %v909_v40 = vpop.f32.mrf.mxu0 }
 0x35c   : > { %v913_v41 = vmul.f32 %v1667_v39, %v909_v40 }
 0x35e   : > { %v914_v42 = vpack.c.bf16 %v913_v41, %v913_v41  ;;  %v940_v43 = vpop.f32.mrf.mxu1 }
 0x35f   : > { %v944_v44 = vmul.f32 0.35355338, %v940_v43 }
 0x360   : > { %1497 = vmatmul.msk.bf16.vlgmr.msra.gmra.mxu0 %vm861_vm8, %v914_v42 }
 0x361   : > { %v945_v45 = vsel %vm861_vm8, %v944_v44, -inf }
 0x362   : > { %946 = vmax.xlane.f32.xlu0 %v945_v45 }
 0x363   : > { %v911_v46 = vpop.f32.mrf.mxu0  ;;  %v1023_v47 = vpop.permute.xlu0 %1022 }
 0x364   : > { %v1028_v48 = vsel %vm861_vm8, %v1023_v47, 0 }
 0x365   : > { %1037 = vmatpush.bf16.xpose.msra.mxu1 %v1028_v48 }
 0x366   : > { %v942_v49 = vpop.f32.mrf.mxu1 }
 0x36c   : > { %1498 = vmatmul.msk.bf16.vlgmr.msra.gmra.mxu1 %vm861_vm8, %v1021_v33 }
 0x370   : > { %1501 = vmatmul.msk.bf16.vlgmr.msrb.gmra.mxu0 %vm861_vm8, %v1099_v50 }
 0x376   : > { %1055 = vrot.lane.b32.xlu0 %v2157_v21, %s1903_s22 }
 0x3d5   : > { %v947_v51 = vpop.xlane.xlu0 %946 }
 0x3d6   : > { %v948_v52 = vsub.f32 %v944_v44, %v947_v51 }
 0x3d8   : > { %v949_v53 = vmul.f32 1.442695, %v948_v52 }
 0x3da   : > { %1668 = vpow2.f32 %v949_v53  ;;  %v1653_v53 = vld [vmem:[%s2276_s9] ss:$0 sm:$0xff] }
 0x3dd   : > { %v2175_v54 = vpop.f32.mrf.mxu0 }
 0x3e0   : > { %v1669_v55 = vpop.eup %1668 }
 0x3e1   : > { %v955_v56 = vpack.c.bf16 %v1669_v55, %v1669_v55  ;;  %v951_v5 = vsel %vm861_vm8, %v1669_v55, 0.0 }
 0x3e3   : > { %1495 = vmatmul.msk.bf16.vlgmr.msrb.gmra.mxu2 %vm861_vm8, %v955_v56 }
 0x3e5   : > { %v1018_v57 = vpop.f32.mrf.mxu0 }
 0x3e8   : > { %v1056_v58 = vpop.permute.xlu0 %1055 }
 0x3e9   : > { %v1061_v59 = vsel %vm896_vm9, %v1056_v58, 0  ;;  %v1039_v60 = vpop.f32.mrf.mxu1 }
 0x3ea   : > { %v1043_v61 = vmul.f32 0.35355338, %v1039_v60  ;;  %1070 = vmatpush.bf16.msra.mxu2 %v1061_v59 }
 0x3ec   : > { %v1044_v62 = vsel %vm861_vm8, %v1043_v61, -inf }
 0x3ed   : > { %1045 = vmax.xlane.f32.xlu1 %v1044_v62  ;;  %v1117_v63 = vpop.f32.mrf.mxu0 }
 0x3ee   : > { %v1121_v0 = vmul.f32 0.35355338, %v1117_v63  ;;  %1169 = vmatpush.bf16.msrb.mxu2 %v1160_v32  ;;  %v1541_v63 = vld [vmem:[#allocation8 + $0x8] sm:$0xff] }
 0x3f0   : > { %v1122_v1 = vsel %vm861_vm8, %v1121_v0, -inf }
 0x3f1   : > { %v1041_v3 = vpop.f32.mrf.mxu1  ;;  %1123 = vmax.xlane.f32.xlu2 %v1122_v1 }
 0x3f5   : > { %v1119_v4 = vpop.f32.mrf.mxu0 }
 0x3f6   : > { %v1544_v4 = vld [vmem:[%s2283_s16 + $0x10] sm:$0xff] }
 0x3f9   : > { %952 = vadd.xlane.f32.xlu2 %v951_v5 }
 0x406   : > { %1133 = vrot.lane.b32.xlu1 %v2157_v21, %s1902_s26  ;;  %s1324_s26 = sshll.u32 %s1320_s29, 4  ;;  %s1325_s26 = int_to_ptr.hbm [resolvable:$true] %s1324_s26 }
 0x407   : > { %s1816_s18 = sshra.s32 %s1325_s26, 4  ;;  %s1817_s18 = int_to_ptr.hbm [resolvable:$true] %s1816_s18 }
 0x408   : > { %s1818_s22 = scalar_lea.hbm %s1817_s18, 8  ;;  %p1823_p5 = scmp.lt.s32.totalorder %s1817_s18, %s2326_s17 }
 0x409   : > { %p1819_p1 = scmp.ne.s32.totalorder %s1817_s18, %s1818_s22  ;;  %p1824_p6 = scmp.lt.s32.totalorder %s1822_s0, %s1818_s22 }
 0x40b   : > { %p1820_p2 = pnand %p1819_p1, %p2039_p4  ;;  %p1825_p7 = por %p1824_p6, %p1823_p5 }
 0x40d   : > { %p1821_p3 = pneg %p1820_p2 }
 0x40f   : > { %p1826_p9 = pnand %p1825_p7, %p1821_p3 }
 0x460   : > { %v1046_v8 = vpop.xlane.xlu1 %1045 }
 0x461   : > { %v1047_v9 = vsub.f32 %v1043_v61, %v1046_v8 }
 0x463   : > { %v1048_v11 = vmul.f32 1.442695, %v1047_v9 }
 0x464   : > { %v1124_v12 = vpop.xlane.xlu2 %1123 }
 0x465   : > { %1670 = vpow2.f32 %v1048_v11  ;;  %v1125_v13 = vsub.f32 %v1121_v0, %v1124_v12  ;;  %v1540_v0 = vld [vmem:[#allocation8] sm:$0xff] }
 0x466   : > { %v976_v14 = vpop.f32.mrf.mxu2 }
 0x467   : > { %v1126_v15 = vmul.f32 1.442695, %v1125_v13 }
 0x469   : > { %1672 = vpow2.f32 %v1126_v15  ;;  %v1655_v15 = vld [vmem:[%s2280_s13] ss:$0 sm:$0xff] }
 0x46b   : > { %v1671_v16 = vpop.eup %1670 }
 0x46c   : > { %v1054_v17 = vpack.c.bf16 %v1671_v16, %v1671_v16  ;;  %v953_v18 = vpop.xlane.xlu2 %952  ;;  %v1050_v19 = vsel %vm861_vm8, %v1671_v16, 0.0 }
 0x46d   : > { %1674 = vrcp.f32 %v953_v18  ;;  %1051 = vadd.xlane.f32.xlu2 %v1050_v19  ;;  %v1543_v19 = vld [vmem:[%s2283_s16 + $0x8] sm:$0xff] }
 0x46e   : > { %v978_v20 = vpop.f32.mrf.mxu2  ;;  %1499 = vmatmul.msk.bf16.vlgmr.msra.gmra.mxu2 %vm861_vm8, %v1054_v17 }
 0x46f   : > { %v1673_v21 = vpop.eup %1672  ;;  %v1542_v20 = vld [vmem:[%s2283_s16] sm:$0xff] }
 0x470   : > { %v1128_v22 = vsel %vm861_vm8, %v1673_v21, 0.0  ;;  %v1132_v28 = vpack.c.bf16 %v1673_v21, %v1673_v21  ;;  %v1656_v21 = vld [vmem:[%s2324_s27] ss:$0 sm:$0xff] }
 0x471   : > { %1129 = vadd.xlane.f32.xlu0 %v1128_v22 }
 0x473   : > { %v1675_v23 = vpop.eup %1674 }
 0x474   : > { %v980_v24 = vmul.f32 %v1675_v23, %v976_v14 }
 0x476   : > { %v981_v25 = vpack.c.bf16 %v980_v24, %v980_v24 }
 0x478   : > { %v1134_v26 = vpop.permute.xlu1 %1133  ;;  %1496 = vmatmul.msk.bf16.vlgmr.msrb.gmra.mxu3 %vm861_vm8, %v981_v25 }
 0x479   : > { %v1139_v27 = vsel %vm896_vm9, %v1134_v26, 0  ;;  %1244 = vmatpush.bf16.msrb.mxu3 %v1541_v63 }
 0x47a   : > { %1148 = vmatpush.bf16.msrb.mxu1 %v1139_v27  ;;  %v1657_v27 = vld [vmem:[%s2325_s24] ss:$0 sm:$0xff] }
 0x47d   : > { %1502 = vmatmul.msk.bf16.vlgmr.msrb.gmra.mxu1 %vm861_vm8, %v1132_v28  ;;  %1245 = vmatpush.bf16.msrb.mxu3 %v1540_v0 }
 0x4e0   : > { %v1052_v33 = vpop.xlane.xlu2 %1051 }
 0x4e1   : > { %1676 = vrcp.f32 %v1052_v33 }
 0x4e4   : > { %v1130_v35 = vpop.xlane.xlu0 %1129 }
 0x4e5   : > { %1678 = vrcp.f32 %v1130_v35 }
 0x4e7   : > { %v1677_v34 = vpop.eup %1676 }
 0x4eb   : > { %v1679_v40 = vpop.eup %1678 }
 0x4f1   : > { %v1072_v36 = vpop.f32.mrf.mxu2 }
 0x4f2   : > { %v1076_v37 = vmul.f32 %v1677_v34, %v1072_v36 }
 0x4f4   : > { %v1077_v38 = vpack.c.bf16 %v1076_v37, %v1076_v37 }
 0x4f6   : > { %1500 = vmatmul.msk.bf16.vlgmr.msra.gmra.mxu3 %vm861_vm8, %v1077_v38 }
 0x4f9   : > { %v1074_v39 = vpop.f32.mrf.mxu2 }
 0x4fa   : > { %v1150_v41 = vpop.f32.mrf.mxu1 }
 0x4fb   : > { %v1154_v42 = vmul.f32 %v1679_v40, %v1150_v41  ;;  %v997_v43 = vpop.f32.mrf.mxu3 }
 0x4fc   : > { %v1017_v48 = vadd.f32 %v2175_v54, %v997_v43 }
 0x4fd   : > { %v1155_v44 = vpack.c.bf16 %v1154_v42, %v1154_v42 }
 0x4ff   : > { %1503 = vmatmul.msk.bf16.vlgmr.msrb.gmra.mxu2 %vm861_vm8, %v1155_v44 }
 0x502   : > { %v1152_v45 = vpop.f32.mrf.mxu1 }
 0x503   : > { %v999_v46 = vpop.f32.mrf.mxu3 }
 0x579   : > { %v1093_v47 = vpop.f32.mrf.mxu3 }
 0x57a   : > { %v1097_v49 = vadd.f32 %v1093_v47, %v1017_v48 }
 0x581   : > { %v1095_v50 = vpop.f32.mrf.mxu3 }
 0x582   : > { %v1171_v51 = vpop.f32.mrf.mxu2 }
 0x583   : > { %v1175_v52 = vadd.f32 %v1171_v51, %v1097_v49 }
 0x585   : > { %v1176_v55 = vadd.f32 %v1175_v52, %v2113_v2  ;;  %v1545_v2 = vld [vmem:[%s2283_s16 + $0x18] sm:$0xff] }
 0x586   : > { %1297 = vmatpush.bf16.msra.mxu0 %v1545_v2 }
 0x587   : > { %v1181_v56 = vadd.f32 %v1653_v53, %v1176_v55 }
 0x589   : > { %v1184_v57 = vsel %vm685_vm0, %v1181_v56, 0.0 }
 0x58a   : > { %v1173_v58 = vpop.f32.mrf.mxu2  ;;  %1185 = vadd.xlane.f32.xlu2 %v1184_v57  ;;  %1298 = vmatpush.bf16.msra.mxu0 %v1544_v4 }
 0x58e   : > { %1299 = vmatpush.bf16.msra.mxu0 %v1543_v19 }
 0x592   : > { %1300 = vmatpush.bf16.msra.mxu0 %v1542_v20 }
 0x5fd   : > { %v1186_v59 = vpop.xlane.xlu2 %1185 }
 0x5fe   : > { %v1187_v60 = vmul.f32 %v1186_v59, %v2117_v10 }
 0x600   : > { %v1188_v61 = vsub.f32 %v1181_v56, %v1187_v60 }
 0x602   : > { %v1189_v54 = vmul.f32 %v1188_v61, %v1188_v61 }
 0x604   : > { %v1190_v62 = vsel %vm685_vm0, %v1189_v54, 0.0 }
 0x605   : > { %1191 = vadd.xlane.f32.xlu1 %v1190_v62 }
 0x678   : > { %v1192_v1 = vpop.xlane.xlu1 %1191 }
 0x679   : > { %v1193_v3 = vmul.f32 %v1192_v1, %v2117_v10  ;;  %v1654_v10 = vld [vmem:[%s2279_s12] ss:$0 sm:$0xff] }
 0x67b   : > { %v1194_v5 = vadd.f32 1e-05, %v1193_v3 }
 0x67d   : > { %1680 = vrsqrt.f32 %v1194_v5  ;;  %vm1201_vm11 = vweird.f32 %v1194_v5 }
 0x683   : > { %v1681_v6 = vpop.eup %1680 }
 0x684   : > { %v1196_v7 = vmul.f32 %v1681_v6, %v1194_v5  ;;  %vm1202_vm10 = vweird.f32 %v1681_v6 }
 0x685   : > { %vm1203_vm12 = vmor %vm1201_vm11, %vm1202_vm10 }
 0x686   : > { %v1197_v8 = vmul.f32 %v1681_v6, %v1196_v7 }
 0x688   : > { %v1198_v9 = vmul.f32 0.5, %v1197_v8 }
 0x68a   : > { %v1199_v11 = vsub.f32 1.5, %v1198_v9 }
 0x68c   : > { %v1200_v12 = vmul.f32 %v1681_v6, %v1199_v11 }
 0x68e   : > { %v1204_v13 = vsel %vm1203_vm12, %v1681_v6, %v1200_v12 }
 0x68f   : > { %v1205_v14 = vmul.f32 %v1204_v13, %v1188_v61 }
 0x691   : > { %v1209_v16 = vmul.f32 %v1654_v10, %v1205_v14 }
 0x693   : > { %v1213_v17 = vadd.f32 %v1655_v15, %v1209_v16 }
 0x695   : > { %v1214_v18 = vpack.c.bf16 %v1213_v17, %v1213_v17 }
 0x697   : > { %1512 = vmatmul.msk.bf16.vlgmr.msrb.gmra.mxu3 %vm685_vm0, %v1214_v18 }
 0x71a   : > { %v1247_v22 = vpop.f32.mrf.mxu3 }
 0x71b   : > { %v1248_v23 = vadd.f32 %v1656_v21, %v1247_v22 }
 0x71d   : > { %v1251_v24 = vmax.f32 %v1248_v23, 0.0 }
 0x71f   : > { %v1252_v25 = vpack.c.bf16 %v1251_v24, %v1251_v24 }
 0x721   : > { %1529 = vmatmul.msk.bf16.vlgmr.msra.gmra.mxu0 %vm1289_vm13, %v1252_v25 }
 0x722   : > { %v1249_v26 = vpop.f32.mrf.mxu3 }
 0x79e   : > { %v1302_v28 = vpop.f32.mrf.mxu0 }
 0x79f   : > { %v1303_v29 = vadd.f32 %v1657_v27, %v1302_v28 }
 0x7a1   : > { %v1306_v30 = vadd.f32 %v1303_v29, %v1181_v56 }
 0x7a3   : > { %1307 = vst.msk [vmem:[%s668_s2] sm:$0xff] %vm685_vm0, %v1306_v30 }
 0x7a4   : > { %1829 = shalt.err (!%p1826_p9)
}
 0x7a5   : > { %1562 = dma.vmem_to_hbm [thread:$0]  (%p2039_p4), %s1323_s25, 128, %s1325_s26, %s1309_s30  }
 0x7a6   : > { %v1304_v31 = vpop.f32.mrf.mxu0 }
 0x7a7 PF: > { %s2328_s20 = sld [smem:[#allocation19_spill]] }
 0x7a8   : > { %s2329_s24 = sld [smem:[#allocation15_spill]] }
 0x7ad   : > { %p1589_p10 = scmp.ge.s32.totalorder %s2328_s20, 2 }
 0x7ae   : > { %s1336_s15 = sand.u32 1, %s2329_s24  }
 0x7af   : > { %p1578_p11 = pnand %p1589_p10, %p2046_p8  ;;  %s1337_s29 = scalar_lea.sflag [#allocation4], %s1336_s15 }
 0x7b1   : > { %p1579_p12 = pneg %p1578_p11 }
 0x7b3   : > { %1867 = dma.done.wait (%p1579_p12), %s1337_s29, 128  }
 0x7b4   : > { %1869 = vsyncadd (%p1579_p12), %s1337_s29, 4294967168  ;;  %s34_s19 = sadd.s32 1, %s2328_s20   ;;  %s2331_s27 = sld [smem:[#allocation16_spill]] }
 0x7b5   : > { %p31_p13 = scmp.ge.s32.totalorder %s34_s19, 4   ;;  %s2332_s28 = sld [smem:[#allocation17_spill]] }
 0x7b6   : > { %s2333_s29 = sld [smem:[#allocation23_spill]] }
 0x7b7   : > { %s2334_s30 = sld [smem:[#allocation18_spill]]  ;;  %33 = sbr.rel (!%p31_p13) target bundleno = 15 (0xf), region = 147 }
 0x7b8   : > { %s2335_s0 = sld [smem:[#allocation20_spill]] }
 0x7bc   :  { %1343 = vsyncpa [#allocation3], 1 }
 0x7bd   :  { %1345 = vsyncpa [#allocation3 + $0x1], 1 }
 0x7be   :  { %1346 = vsyncpa [#allocation6], 1 }
 0x7bf   :  { %1347 = vsyncpa [#allocation9], 1 }
 0x7c0   :  { %1348 = vsyncpa [#allocation4], 1 }
 0x7c1   :  { %1350 = vsyncpa [#allocation4 + $0x1], 1 }

</bundles_post_ra>
